<compile_context>
chip_gen: v5e
topology: v5e:2x2
jax: 0.10.0
libtpu: 0.0.40
codegen_flags: <defaults>
</compile_context>

<pallas_src>
import functools

import jax
import jax.numpy as jnp
import numpy as np
from jax import lax
from jax.experimental import pallas as pl
from jax.experimental.pallas import tpu as pltpu


# ---------------------------------------------------------------------------
# Helpers
# ---------------------------------------------------------------------------
def _pick_tile(dim, target, align):
    """Largest multiple of `align` that divides `dim` and is <= `target`, else `dim` (full)."""
    if dim <= target:
        return dim
    t = (target // align) * align
    while t >= align:
        if dim % t == 0:
            return t
        t -= align
    return dim


# ---------------------------------------------------------------------------
# Tiled fused linear (matmul + bias) kernel
# ---------------------------------------------------------------------------
def _linear_kernel(x_ref, w_ref, b_ref, o_ref, acc_ref):
    k = pl.program_id(2)

    @pl.when(k == 0)
    def _init():
        acc_ref[...] = jnp.zeros_like(acc_ref)

    acc_ref[...] += jnp.dot(x_ref[...], w_ref[...],
                            preferred_element_type=jnp.float32)

    @pl.when(k == pl.num_programs(2) - 1)
    def _finalize():
        o_ref[...] = (acc_ref[...] + b_ref[...].astype(jnp.float32)).astype(o_ref.dtype)


def linear_pallas(x2d, w, b2d, *, tm=256, tn=256, tk=512):
    # x2d: (M, K), w: (K, N), b2d: (1, N) -> (M, N)
    M, K = x2d.shape
    K2, N = w.shape
    assert K == K2
    tm = _pick_tile(M, tm, 8)      # sublane-aligned row tile
    tn = _pick_tile(N, tn, 128)    # lane-aligned output tile
    tk = _pick_tile(K, tk, 128)    # lane-aligned reduction tile
    grid = (M // tm, N // tn, K // tk)

    cost = pl.CostEstimate(
        flops=2 * M * N * K,
        transcendentals=0,
        bytes_accessed=4 * (M * K + K * N + N + M * N),
    )
    return pl.pallas_call(
        _linear_kernel,
        out_shape=jax.ShapeDtypeStruct((M, N), x2d.dtype),
        grid_spec=pltpu.PrefetchScalarGridSpec(
            num_scalar_prefetch=0,
            grid=grid,
            in_specs=[
                pl.BlockSpec((tm, tk), lambda i, j, k: (i, k)),
                pl.BlockSpec((tk, tn), lambda i, j, k: (k, j)),
                pl.BlockSpec((1, tn), lambda i, j, k: (0, j)),
            ],
            out_specs=pl.BlockSpec((tm, tn), lambda i, j, k: (i, j)),
            scratch_shapes=[pltpu.VMEM((tm, tn), jnp.float32)],
        ),
        compiler_params=pltpu.CompilerParams(
            dimension_semantics=("parallel", "parallel", "arbitrary"),
            vmem_limit_bytes=64 * 1024 * 1024,
        ),
        cost_estimate=cost,
    )(x2d, w, b2d)


# ---------------------------------------------------------------------------
# Fused attention kernel: all heads of one batch element per grid step,
# reading Q/K/V directly from the packed qkv buffer.
# ---------------------------------------------------------------------------
def _attention_kernel(qkv_ref, o_ref, *, num_heads, head_dim, scaling):
    # qkv_ref: (1, T, 3E) packed [Q | K | V]; o_ref: (1, T, E)
    E = num_heads * head_dim
    qkv = qkv_ref[0]                                            # (T, 3E)
    q_all = qkv[:, 0:E].astype(jnp.float32) * scaling           # Q * self.scaling
    k_all = qkv[:, E:2 * E].astype(jnp.float32)
    v_all = qkv[:, 2 * E:3 * E]

    outs = []
    for h in range(num_heads):                                  # static unroll over heads
        lo = h * head_dim
        hi = lo + head_dim
        q = q_all[:, lo:hi]                                     # (T, D)
        k = k_all[:, lo:hi]                                     # (S, D)
        v = v_all[:, lo:hi]                                     # (S, D)
        # scores = q @ k^T without materializing a transpose (contract last dims)
        s = lax.dot_general(q, k, (((1,), (1,)), ((), ())),
                            preferred_element_type=jnp.float32)  # (T, S)
        m = jnp.max(s, axis=-1, keepdims=True)
        p = jnp.exp(s - m)
        denom = jnp.sum(p, axis=-1, keepdims=True)
        p = p * pl.reciprocal(denom, approx=True)               # EUP path, frees VALU
        # TODO(synk): attention-weight dropout omitted (dropout=0.0 / eval mode).
        outs.append(jnp.dot(p.astype(v.dtype), v,
                            preferred_element_type=jnp.float32))  # (T, D)

    # Single lane-dense store of all heads merged along the embed dim
    # (matches torch's view(tgt_len, bsz, embed_dim) head merge: head h -> cols [h*D, (h+1)*D)).
    o_ref[0] = jnp.concatenate(outs, axis=-1).astype(o_ref.dtype)


def attention_pallas(qkv3, num_heads, head_dim, scaling):
    # qkv3: (B, T, 3E) packed [Q | K | V] along the last dim -> (B, T, E)
    B, T, threeE = qkv3.shape
    E = threeE // 3
    kernel = functools.partial(_attention_kernel, num_heads=num_heads,
                               head_dim=head_dim, scaling=scaling)
    cost = pl.CostEstimate(
        flops=4 * B * num_heads * T * T * head_dim,
        transcendentals=B * num_heads * T * T,
        bytes_accessed=4 * (B * T * threeE + B * T * E),
    )
    return pl.pallas_call(
        kernel,
        out_shape=jax.ShapeDtypeStruct((B, T, E), qkv3.dtype),
        grid_spec=pltpu.PrefetchScalarGridSpec(
            num_scalar_prefetch=0,
            grid=(B,),
            in_specs=[pl.BlockSpec((1, T, threeE), lambda b: (b, 0, 0))],
            out_specs=pl.BlockSpec((1, T, E), lambda b: (b, 0, 0)),
        ),
        compiler_params=pltpu.CompilerParams(
            dimension_semantics=("parallel",),
            vmem_limit_bytes=64 * 1024 * 1024,
        ),
        cost_estimate=cost,
    )(qkv3)


# ---------------------------------------------------------------------------
# Module forward (self-attention branch)
# ---------------------------------------------------------------------------
def multihead_attention_forward(query, params, num_heads):
    bsz, tgt_len, embed_dim = query.shape
    head_dim = embed_dim // num_heads
    scaling = float(head_dim) ** (-0.5)

    x2d = query.reshape(bsz * tgt_len, embed_dim)                   # free reshape
    qkv = linear_pallas(x2d, params["w_qkv"], params["b_qkv"])      # (B*T, 3E)
    qkv3 = qkv.reshape(bsz, tgt_len, 3 * embed_dim)                 # free reshape

    attn = attention_pallas(qkv3, num_heads, head_dim, scaling)     # (B, T, E), heads merged
    attn2d = attn.reshape(bsz * tgt_len, embed_dim)                 # free reshape

    out = linear_pallas(attn2d, params["w_out"], params["b_out"])   # (B*T, E)
    return out.reshape(bsz, tgt_len, embed_dim)


# ---------------------------------------------------------------------------
# Pure-JAX reference (for correctness check)
# ---------------------------------------------------------------------------
def reference_forward(query, params, num_heads):
    bsz, tgt_len, embed_dim = query.shape
    head_dim = embed_dim // num_heads
    scaling = float(head_dim) ** (-0.5)

    qkv = query @ params["w_qkv"] + params["b_qkv"][0]
    Q, K, V = jnp.split(qkv, 3, axis=-1)
    Q = Q * scaling

    def to_heads(x):
        L = x.shape[1]
        return (x.reshape(bsz, L, num_heads, head_dim)
                 .transpose(0, 2, 1, 3)
                 .reshape(bsz * num_heads, L, head_dim))

    Qh, Kh, Vh = to_heads(Q), to_heads(K), to_heads(V)
    s = jnp.einsum("btd,bsd->bts", Qh, Kh)
    p = jax.nn.softmax(s, axis=-1)
    o = jnp.einsum("bts,bsd->btd", p, Vh)
    o = (o.reshape(bsz, num_heads, tgt_len, head_dim)
          .transpose(0, 2, 1, 3)
          .reshape(bsz, tgt_len, embed_dim))
    return o @ params["w_out"] + params["b_out"][0]


# ---------------------------------------------------------------------------
# Main
# ---------------------------------------------------------------------------
if __name__ == "__main__":
    bsz, tgt_len, embed_dim, num_heads = 2, 8, 32, 4

    key = jax.random.PRNGKey(0)
    k_q, k_wqkv, k_bqkv, k_wout, k_bout = jax.random.split(key, 5)

    query = jax.random.normal(k_q, (bsz, tgt_len, embed_dim), dtype=jnp.float32)

    params = {
        # stored as (in_features, out_features)
        "w_qkv": 0.05 * jax.random.normal(k_wqkv, (embed_dim, 3 * embed_dim), dtype=jnp.float32),
        "b_qkv": 0.05 * jax.random.normal(k_bqkv, (1, 3 * embed_dim), dtype=jnp.float32),
        "w_out": 0.05 * jax.random.normal(k_wout, (embed_dim, embed_dim), dtype=jnp.float32),
        "b_out": 0.05 * jax.random.normal(k_bout, (1, embed_dim), dtype=jnp.float32),
    }

    out = multihead_attention_forward(query, params, num_heads)
    out = jax.block_until_ready(out)

    ref = reference_forward(query, params, num_heads)
    # Tolerance accounts for the EUP approximate-reciprocal softmax normalization.
    np.testing.assert_allclose(np.asarray(out), np.asarray(ref), rtol=2e-3, atol=2e-3)

    assert out.shape == (bsz, tgt_len, embed_dim)
    print("KERNEL_OK")
</pallas_src>

<mosaic_0001>
module attributes {stable_mosaic.version = 11 : i64} {
  func.func @_linear_kernel(%arg0: i32, %arg1: i32, %arg2: i32, %arg3: memref<16x32xf32, #tpu.memory_space<vmem>>, %arg4: memref<32x96xf32, #tpu.memory_space<vmem>>, %arg5: memref<1x96xf32, #tpu.memory_space<vmem>>, %arg6: memref<16x96xf32, #tpu.memory_space<vmem>>, %arg7: memref<16x96xf32, #tpu.memory_space<vmem>>) attributes {dimension_semantics = [#tpu.dimension_semantics<parallel>, #tpu.dimension_semantics<parallel>, #tpu.dimension_semantics<arbitrary>], iteration_bounds = array<i64: 1, 1, 1>, scalar_prefetch = 0 : i64, scratch_operands = 1 : i64, tpu.core_type = #tpu.core_type<tc>, window_params = [{transform_indices = @transform_0, window_bounds = array<i64: 16, 32>}, {transform_indices = @transform_1, window_bounds = array<i64: 32, 96>}, {transform_indices = @transform_2, window_bounds = array<i64: 1, 96>}, {transform_indices = @transform_3, window_bounds = array<i64: 16, 96>}]} {
    %c0_i32 = arith.constant 0 : i32
    %0 = arith.cmpi eq, %arg2, %c0_i32 : i32
    %1 = arith.extui %0 : i1 to i32
    %c0_i32_0 = arith.constant 0 : i32
    %2 = arith.cmpi ne, %1, %c0_i32_0 : i32
    scf.if %2 {
      %cst_10 = arith.constant 0.000000e+00 : f32
      %12 = vector.broadcast %cst_10 : f32 to vector<16x96xf32>
      %c0_11 = arith.constant 0 : index
      %c0_12 = arith.constant 0 : index
      %13 = vector.load %arg7[%c0_11, %c0_12] : memref<16x96xf32, #tpu.memory_space<vmem>>, vector<16x96xf32>
      tpu.vector_store %arg7[%c0_11, %c0_12], %12 {strides = array<i32>} : memref<16x96xf32, #tpu.memory_space<vmem>>, vector<16x96xf32>,
    } else {
    }
    %c0 = arith.constant 0 : index
    %c0_1 = arith.constant 0 : index
    %3 = vector.load %arg7[%c0, %c0_1] : memref<16x96xf32, #tpu.memory_space<vmem>>, vector<16x96xf32>
    %c0_2 = arith.constant 0 : index
    %c0_3 = arith.constant 0 : index
    %4 = vector.load %arg3[%c0_2, %c0_3] : memref<16x32xf32, #tpu.memory_space<vmem>>, vector<16x32xf32>
    %c0_4 = arith.constant 0 : index
    %c0_5 = arith.constant 0 : index
    %5 = vector.load %arg4[%c0_4, %c0_5] : memref<32x96xf32, #tpu.memory_space<vmem>>, vector<32x96xf32>
    %cst = arith.constant dense<0.000000e+00> : vector<16x96xf32>
    %6 = tpu.matmul %4, %5, %cst {dimension_numbers = #tpu.dot_dimension_numbers<[1], [0], [0], [1], [0, 0, 1, 1], [], []>} : vector<16x32xf32>, vector<32x96xf32>, vector<16x96xf32> -> vector<16x96xf32>
    %7 = arith.addf %3, %6 : vector<16x96xf32>
    %c0_6 = arith.constant 0 : index
    %c0_7 = arith.constant 0 : index
    %8 = vector.load %arg7[%c0_6, %c0_7] : memref<16x96xf32, #tpu.memory_space<vmem>>, vector<16x96xf32>
    tpu.vector_store %arg7[%c0_6, %c0_7], %7 {strides = array<i32>} : memref<16x96xf32, #tpu.memory_space<vmem>>, vector<16x96xf32>,
    %c0_i32_8 = arith.constant 0 : i32
    %9 = arith.cmpi eq, %arg2, %c0_i32_8 : i32
    %10 = arith.extui %9 : i1 to i32
    %c0_i32_9 = arith.constant 0 : i32
    %11 = arith.cmpi ne, %10, %c0_i32_9 : i32
    scf.if %11 {
      %c0_10 = arith.constant 0 : index
      %c0_11 = arith.constant 0 : index
      %12 = vector.load %arg7[%c0_10, %c0_11] : memref<16x96xf32, #tpu.memory_space<vmem>>, vector<16x96xf32>
      %c0_12 = arith.constant 0 : index
      %c0_13 = arith.constant 0 : index
      %13 = vector.load %arg5[%c0_12, %c0_13] : memref<1x96xf32, #tpu.memory_space<vmem>>, vector<1x96xf32>
      %14 = vector.broadcast %13 : vector<1x96xf32> to vector<16x96xf32>
      %15 = arith.addf %12, %14 : vector<16x96xf32>
      %c0_14 = arith.constant 0 : index
      %c0_15 = arith.constant 0 : index
      %16 = vector.load %arg6[%c0_14, %c0_15] : memref<16x96xf32, #tpu.memory_space<vmem>>, vector<16x96xf32>
      tpu.vector_store %arg6[%c0_14, %c0_15], %15 {strides = array<i32>} : memref<16x96xf32, #tpu.memory_space<vmem>>, vector<16x96xf32>,
    } else {
    }
    return
  }
  func.func @transform_0(%arg0: i32, %arg1: i32, %arg2: i32) -> (i32, i32) {
    %c0_i32 = arith.constant 0 : i32
    return %arg0, %arg2 : i32, i32
  }
  func.func @transform_1(%arg0: i32, %arg1: i32, %arg2: i32) -> (i32, i32) {
    %c0_i32 = arith.constant 0 : i32
    return %arg2, %arg1 : i32, i32
  }
  func.func @transform_2(%arg0: i32, %arg1: i32, %arg2: i32) -> (i32, i32) {
    %c0_i32 = arith.constant 0 : i32
    %c0_i32_0 = arith.constant 0 : i32
    return %c0_i32, %arg1 : i32, i32
  }
  func.func @transform_3(%arg0: i32, %arg1: i32, %arg2: i32) -> (i32, i32) {
    %c0_i32 = arith.constant 0 : i32
    return %arg0, %arg1 : i32, i32
  }
}

</mosaic_0001>

<bundles_post_ra>
// kernel: tpu_custom_call.1
= control target key start
LH: loop header
LB: loop body
LE: loop exit
PB: predicated region body
PF: predicated region fallthrough
CT: control target
= control target key end

     0   :  { %8 = vsyncpa [#allocation4], 0  ;;  %s274_s0 = inlined_call_operand.hbm [shape: f32[16,32], index: 0, kind: input, shape index: {}]   ;;  %s275_s1 = inlined_call_operand.hbm [shape: f32[32,96], index: 1, kind: input, shape index: {}]   ;;  %s276_s2 = inlined_call_operand.vmem [shape: f32[1,96], index: 2, kind: input, shape index: {}]   ;;  %s277_s3 = inlined_call_operand.hbm [shape: f32[16,96], index: 3, kind: output, shape index: {}]  }
   0x1   :  { %9 = vsyncpa [#allocation7], 0 }
   0x2   :  { %10 = vsyncpa [#allocation5], 0  ;;  %s15_s14 = sshll.u32 %s274_s0, 4  ;;  %s221_s15 = smov [#allocation3]   ;;  %s16_s14 = int_to_ptr.hbm [resolvable:$true] %s15_s14 }
   0x3   :  { %s17_s16 = sshll.u32 %s221_s15, 4  ;;  %s28_s19 = sshll.u32 %s275_s1, 4  ;;  %s18_s16 = int_to_ptr.vmem [resolvable:$true] %s17_s16  ;;  %s29_s19 = int_to_ptr.hbm [resolvable:$true] %s28_s19 }
   0x4   :  { %s222_s20 = smov 128   ;;  %s223_s21 = smov 8  }
   0x5   :  { %23 = dma.hbm_to_vmem [thread:$0]  %s16_s14, 256, %s18_s16, [#allocation4], %s222_s20, %s222_s20, %s223_s21  }
   0x6   :  { %s224_s22 = smov [#allocation6]  }
   0x7   :  { %s30_s23 = sshll.u32 %s224_s22, 4  ;;  %s31_s23 = int_to_ptr.vmem [resolvable:$true] %s30_s23 }
   0x8   :  { %36 = dma.hbm_to_vmem [thread:$0]  %s29_s19, 512, %s31_s23, [#allocation7], %s222_s20, %s222_s20, %s223_s21  }
   0x9   :  { %215 = dma.done.wait [#allocation4], 256  }
   0xa   :  { %216 = vsyncadd [#allocation4], 4294967040 }
   0xb   :  { %217 = dma.done.wait [#allocation7], 512  }
   0xc   :  { %218 = vsyncadd [#allocation7], 4294966784  ;;  %vm51_vm0 = vcmask 785408   ;;  %v225_v0 = vmov 0.0   ;;  %v61_v1 = vld [vmem:[#allocation6 + $0x18] sm:$0xff]  ;;  %v60_v2 = vld [vmem:[#allocation6 + $0x10] sm:$0xff] }
   0xd   :  { %52 = vst.msk [vmem:[#allocation2] sm:$0xff] %vm51_vm0, %v225_v0  ;;  %81 = vmatpush.msra.mxu0 %v61_v1  ;;  %132 = vmatpush.msra.mxu1 %v61_v1  ;;  %v59_v3 = vld [vmem:[#allocation6 + $0x8] sm:$0xff]  ;;  %v58_v4 = vld [vmem:[#allocation6] sm:$0xff]  ;;  %v56_v5 = vld [vmem:[#allocation3] sm:$0xff]  ;;  %vm62_vm1 = vcmask 261120   ;;  %s226_s24 = smov [#allocation8]  }
   0xe   :  { %53 = vst.msk [vmem:[#allocation2 + $0x8] sm:$0xff] %vm51_vm0, %v225_v0  ;;  %v57_v6 = vld [vmem:[#allocation3 + $0x8] sm:$0xff]  ;;  %v142_v13 = vld [vmem:[%s276_s2] ss:$0 sm:$0xff]  ;;  %s114_s25 = sshll.u32 %s226_s24, 4  ;;  %s116_s28 = sshll.u32 %s277_s3, 4  ;;  %s115_s25 = int_to_ptr.vmem [resolvable:$true] %s114_s25  ;;  %s117_s28 = int_to_ptr.hbm [resolvable:$true] %s116_s28 }
   0xf   :  { %82 = vmatpush.msra.mxu0 %v60_v2  ;;  %133 = vmatpush.msra.mxu1 %v60_v2 }
  0x11   :  { %83 = vmatpush.msra.mxu0 %v59_v3  ;;  %134 = vmatpush.msra.mxu1 %v59_v3 }
  0x13   :  { %84 = vmatpush.msra.mxu0 %v58_v4  ;;  %135 = vmatpush.msra.mxu1 %v58_v4 }
  0x14   :  { %130 = vmatmul.msk.f32.vlgmr.msra.gmra.mxu0 %vm62_vm1, %v56_v5  ;;  %131 = vmatmul.msk.f32.vlgmr.msra.gmra.mxu1 %vm62_vm1, %v57_v6  ;;  %v54_v7 = vld [vmem:[#allocation2] sm:$0xff] }
  0x15   :  { %v55_v8 = vld [vmem:[#allocation2 + $0x8] sm:$0xff] }
  0x91   :  { %v86_v9 = vpop.f32.mrf.mxu0  ;;  %v89_v10 = vpop.f32.mrf.mxu1 }
  0x92   :  { %v92_v11 = vadd.f32 %v86_v9, %v54_v7  ;;  %v93_v12 = vadd.f32 %v89_v10, %v55_v8 }
  0x94   :  { %95 = vst.msk [vmem:[#allocation2] sm:$0xff] %vm51_vm0, %v92_v11 }
  0x95   :  { %96 = vst.msk [vmem:[#allocation2 + $0x8] sm:$0xff] %vm51_vm0, %v93_v12 }
  0x9b   :  { %v100_v14 = vld [vmem:[#allocation2] sm:$0xff] }
  0x9c   :  { %v101_v15 = vld [vmem:[#allocation2 + $0x8] sm:$0xff]  ;;  %v106_v16 = vadd.f32 %v142_v13, %v100_v14 }
  0x9d   :  { %v107_v17 = vadd.f32 %v142_v13, %v101_v15 }
  0x9e   :  { %108 = vst.msk [vmem:[#allocation8] sm:$0xff] %vm51_vm0, %v106_v16 }
  0x9f   :  { %109 = vst.msk [vmem:[#allocation8 + $0x8] sm:$0xff] %vm51_vm0, %v107_v17 }
  0xa0   :  { %122 = dma.vmem_to_hbm [thread:$0]  %s115_s25, 256, %s117_s28, [#allocation5], %s222_s20, %s222_s20, %s223_s21  }
  0xa1   :  { %219 = dma.done.wait [#allocation5], 256  }
  0xa2   :  { %220 = vsyncadd [#allocation5], 4294967040 }
  0xa3   :  { %127 = vsyncpa [#allocation4], 1 }
  0xa4   :  { %128 = vsyncpa [#allocation7], 1 }
  0xa5   :  { %129 = vsyncpa [#allocation5], 1 }

</bundles_post_ra>
